<compile_context>
chip_gen: v7x
topology: tpu7x:2x2x1
jax: 0.10.0
libtpu: 0.0.40
codegen_flags: <defaults>
</compile_context>

<pallas_src>
import jax
import jax.numpy as jnp
import numpy as np
from jax.experimental import pallas as pl
from jax.experimental.pallas import tpu as pltpu


# ----------------------------- Pallas kernel ------------------------------- #
def _pair_wise_kernel(
    pe_b_ref, pe_a_ref, pre_ref,          # (TB, Dp) f32, (TB, Dp) f32, (TB, 2) f32
    wdb_ref, bdb_ref, wda_ref, bda_ref,   # (Dp, Dp) bf16, (1, Dp) f32  (x2)
    wpbT_ref, wpaT_ref,                   # (2, Dp) f32 transposed pair_weight mats
    out_ref,                              # (TB, 2) f32
):
    f32 = jnp.float32
    bf16 = jnp.bfloat16

    # Dense + tanh: bf16 MXU pass with f32 accumulation; the f32->bf16 cast of
    # the activations runs on the VPU (free under the MXU).
    pooled_b = jnp.tanh(
        jnp.dot(pe_b_ref[...].astype(bf16), wdb_ref[...],
                preferred_element_type=f32) + bdb_ref[...]
    )
    pooled_a = jnp.tanh(
        jnp.dot(pe_a_ref[...].astype(bf16), wda_ref[...],
                preferred_element_type=f32) + bda_ref[...]
    )
    # TODO(synk): nn.Dropout(0.1) is identity here (eval mode); training-mode
    # dropout would need pltpu.prng_seed / pltpu.prng_random_bits.

    # 2-wide pair_weight projections as VPU multiply + XLU lane-reduce: an N=2
    # matmul would waste >98% of the MXU output lanes, so keep it off the MXU.
    def proj2(x, wT_ref):
        c0 = jnp.sum(x * wT_ref[0:1, :], axis=-1, keepdims=True)   # (TB, 1)
        c1 = jnp.sum(x * wT_ref[1:2, :], axis=-1, keepdims=True)   # (TB, 1)
        return jnp.concatenate([c0, c1], axis=-1)                  # (TB, 2)

    logits = proj2(pooled_b, wpbT_ref) + proj2(pooled_a, wpaT_ref) + pre_ref[...]
    out_ref[...] = logits.astype(out_ref.dtype)


# ------------------------------ host wrapper -------------------------------- #
def _round_up(x, m):
    return (x + m - 1) // m * m


def pair_wise_forward_pallas(pe_bert, pe_albert, data_bert, data_albert,
                             idxs, js, ks, params, *, tile_b=512):
    """pe_* are (B, D) f32; data_* are (N, S, D) f32; idxs/js/ks are (B,) int32.

    params is a dict of (in, out)-layout weights / biases (see init_params).
    """
    B, D = pe_bert.shape
    N, S, _ = data_bert.shape
    Dp = _round_up(D, 128)

    # --- host precompute: project the small (N,S,D) tables with the 2-wide
    # linears once, gather to (B,2), fold all 2-wide biases in. -----------------
    flat_b = data_bert.reshape(N * S, D)
    flat_a = data_albert.reshape(N * S, D)
    proj_b1 = flat_b @ params["W_1_bert_w"]                                  # (N*S, 2)
    proj_b2 = flat_b @ params["W_2_bert_w"]
    # NOTE: the original PyTorch applies BOTH W_1_albert and W_2_albert to index j.
    proj_a = flat_a @ (params["W_1_albert_w"] + params["W_2_albert_w"])
    lin_j = idxs * S + js
    lin_k = idxs * S + ks
    bias2 = (params["pair_weight_bert_b"] + params["pair_weight_albert_b"]
             + params["W_1_bert_b"] + params["W_2_bert_b"]
             + params["W_1_albert_b"] + params["W_2_albert_b"])
    pre = proj_b1[lin_j] + proj_b2[lin_k] + proj_a[lin_j] + bias2            # (B, 2)

    # --- per-generation VMEM budget --------------------------------------------
    try:
        vmem_cap = int(pltpu.get_tpu_info().vmem_capacity_bytes)
    except Exception:
        vmem_cap = 64 * 1024 * 1024          # conservative (v7x-sized) fallback
    vmem_limit = max(32 * 1024 * 1024, vmem_cap * 3 // 4)   # ~48 MiB v7x, ~96 MiB v5e/v6e

    # --- batch tile: multiple of 16 (bf16 sublane packing), >=2 grid steps when
    # the batch allows it (second TensorCore on v7x), sized to the VMEM budget. --
    TB = max(16, min(tile_b, _round_up(B, 16)))
    if B > 16 and _round_up(B, TB) // TB < 2:
        TB = _round_up((B + 1) // 2, 16)

    def vmem_bytes(tb):
        w = 2 * Dp * Dp * 2                  # two resident bf16 (Dp,Dp), single-buffered
        w += 2 * (1 * Dp * 4) * 2            # dense biases (double-buffered, tiny)
        w += 2 * (2 * Dp * 4) * 2            # wpbT / wpaT
        acts = 2 * (tb * Dp * 4) * 2         # pe_b / pe_a f32, double-buffered
        small = 2 * (tb * 2 * 4) * 2         # pre + out
        return w + acts + small

    while TB > 16 and vmem_bytes(TB) > vmem_limit * 4 // 5:
        TB = max(16, _round_up(TB // 2, 16))

    Bp = _round_up(B, TB)
    grid = (Bp // TB,)

    # --- padding (skipped entirely when already aligned) -----------------------
    def pad_act(x):
        if Bp == B and Dp == D:
            return x
        return jnp.pad(x, [(0, Bp - B), (0, Dp - D)])

    pe_b = pad_act(pe_bert)            # stays f32; bf16 cast happens in-kernel
    pe_a = pad_act(pe_albert)
    pre_p = pre if Bp == B else jnp.pad(pre, [(0, Bp - B), (0, 0)])

    def pad_sq(w):                     # (D, D) -> (Dp, Dp)
        return w if Dp == D else jnp.pad(w, [(0, Dp - D), (0, Dp - D)])

    def pad_row(b):                    # (D,) -> (1, Dp)
        b = b if Dp == D else jnp.pad(b, [(0, Dp - D)])
        return b.reshape(1, Dp)

    def pad_projT(w):                  # (D, 2) -> (2, Dp), transposed
        wt = w.T
        return wt if Dp == D else jnp.pad(wt, [(0, 0), (0, Dp - D)])

    wdb = pad_sq(params["dense_bert_w"]).astype(jnp.bfloat16)
    wda = pad_sq(params["dense_albert_w"]).astype(jnp.bfloat16)
    bdb = pad_row(params["dense_bert_b"])
    bda = pad_row(params["dense_albert_b"])
    wpbT = pad_projT(params["pair_weight_bert_w"])
    wpaT = pad_projT(params["pair_weight_albert_w"])

    # --- block specs ------------------------------------------------------------
    act_spec = pl.BlockSpec((TB, Dp), lambda i: (i, 0))       # tiled over batch
    small_spec = pl.BlockSpec((TB, 2), lambda i: (i, 0))

    def build(single_buffer):
        def w_spec(shape):                                    # resident weights
            if single_buffer:
                return pl.BlockSpec(shape, lambda i: (0, 0),
                                    pipeline_mode=pl.Buffered(1))
            return pl.BlockSpec(shape, lambda i: (0, 0))

        in_specs = [
            act_spec, act_spec, small_spec,
            w_spec((Dp, Dp)), w_spec((1, Dp)),
            w_spec((Dp, Dp)), w_spec((1, Dp)),
            w_spec((2, Dp)), w_spec((2, Dp)),
        ]
        return pl.pallas_call(
            _pair_wise_kernel,
            out_shape=jax.ShapeDtypeStruct((Bp, 2), jnp.float32),
            grid=grid,
            in_specs=in_specs,
            out_specs=small_spec,
            compiler_params=pltpu.CompilerParams(
                dimension_semantics=("parallel",),            # megacore-shardable
                vmem_limit_bytes=vmem_limit,
            ),
        )

    args = (pe_b, pe_a, pre_p, wdb, bdb, wda, bda, wpbT, wpaT)
    try:
        out_padded = build(single_buffer=True)(*args)
    except Exception:
        # Fallback if Buffered(1) is rejected by this Pallas build.
        out_padded = build(single_buffer=False)(*args)

    return out_padded[:B]


# ------------------------------- glue / init -------------------------------- #
def init_params(key, d_model):
    """Deterministic init mimicking nn.Linear default U(-1/sqrt(fan_in), ..)."""
    names_out = {
        "dense_bert": d_model, "dense_albert": d_model,
        "W_1_bert": 2, "W_2_bert": 2, "W_1_albert": 2, "W_2_albert": 2,
        "pair_weight_bert": 2, "pair_weight_albert": 2,
    }
    params = {}
    for name, out_dim in names_out.items():
        key, kw, kb = jax.random.split(key, 3)
        bound = 1.0 / np.sqrt(d_model)
        # stored as (in, out) so the forward computes x @ W
        params[name + "_w"] = jax.random.uniform(
            kw, (d_model, out_dim), jnp.float32, -bound, bound)
        params[name + "_b"] = jax.random.uniform(
            kb, (out_dim,), jnp.float32, -bound, bound)
    return params


def reference_forward(pe_b, pe_a, data_b, data_a, idxs, js, ks, params):
    """Matched-precision reference: dense matmuls with bf16 inputs / f32 accum,
    everything else in f32 — mirrors the kernel's numerics."""
    bf16, f32 = jnp.bfloat16, jnp.float32
    pooled_b = jnp.tanh(
        jnp.dot(pe_b.astype(bf16), params["dense_bert_w"].astype(bf16),
                preferred_element_type=f32) + params["dense_bert_b"])
    pooled_a = jnp.tanh(
        jnp.dot(pe_a.astype(bf16), params["dense_albert_w"].astype(bf16),
                preferred_element_type=f32) + params["dense_albert_b"])
    gb_j = data_b[idxs, js]
    gb_k = data_b[idxs, ks]
    ga_j = data_a[idxs, js]      # original PyTorch reuses index j for both albert terms
    return (
        pooled_b @ params["pair_weight_bert_w"] + params["pair_weight_bert_b"]
        + pooled_a @ params["pair_weight_albert_w"] + params["pair_weight_albert_b"]
        + gb_j @ params["W_1_bert_w"] + params["W_1_bert_b"]
        + gb_k @ params["W_2_bert_w"] + params["W_2_bert_b"]
        + ga_j @ params["W_1_albert_w"] + params["W_1_albert_b"]
        + ga_j @ params["W_2_albert_w"] + params["W_2_albert_b"]
    )


if __name__ == "__main__":
    d_model = 32       # small stand-in for 768 (padded to 128 lanes in the wrapper)
    B = 32             # number of pairs in the batch
    N, S = 2, 4        # data_after_level_two: (N docs, S sentences, d_model)

    key = jax.random.PRNGKey(0)
    k_par, k1, k2, k3, k4 = jax.random.split(key, 5)
    params = init_params(k_par, d_model)

    pair_embeddings_bert = jax.random.normal(k1, (B, d_model), jnp.float32)
    pair_embeddings_albert = jax.random.normal(k2, (B, d_model), jnp.float32)
    data_after_level_two_bert = jax.random.normal(k3, (N, S, d_model), jnp.float32)
    data_after_level_two_albert = jax.random.normal(k4, (N, S, d_model), jnp.float32)

    # batch_index_to_pair_dict: i -> (idx, j, k); static Python glue.
    rng = np.random.RandomState(0)
    batch_index_to_pair_dict = {
        i: (int(rng.randint(N)), int(rng.randint(S)), int(rng.randint(S)))
        for i in range(B)
    }
    idxs = jnp.array([batch_index_to_pair_dict[i][0] for i in range(B)], jnp.int32)
    js = jnp.array([batch_index_to_pair_dict[i][1] for i in range(B)], jnp.int32)
    ks = jnp.array([batch_index_to_pair_dict[i][2] for i in range(B)], jnp.int32)

    out = pair_wise_forward_pallas(
        pair_embeddings_bert, pair_embeddings_albert,
        data_after_level_two_bert, data_after_level_two_albert,
        idxs, js, ks, params,
    )
    out = jax.block_until_ready(out)

    ref = reference_forward(
        pair_embeddings_bert, pair_embeddings_albert,
        data_after_level_two_bert, data_after_level_two_albert,
        idxs, js, ks, params,
    )
    np.testing.assert_allclose(np.asarray(out), np.asarray(ref), rtol=1e-4, atol=1e-4)

    print("KERNEL_OK")
</pallas_src>

<mosaic_0001>
module attributes {stable_mosaic.version = 11 : i64} {
  func.func @_pair_wise_kernel(%arg0: i32, %arg1: memref<16x128xf32, #tpu.memory_space<vmem>>, %arg2: memref<16x128xf32, #tpu.memory_space<vmem>>, %arg3: memref<16x2xf32, #tpu.memory_space<vmem>>, %arg4: memref<128x128xbf16, #tpu.memory_space<vmem>>, %arg5: memref<1x128xf32, #tpu.memory_space<vmem>>, %arg6: memref<128x128xbf16, #tpu.memory_space<vmem>>, %arg7: memref<1x128xf32, #tpu.memory_space<vmem>>, %arg8: memref<2x128xf32, #tpu.memory_space<vmem>>, %arg9: memref<2x128xf32, #tpu.memory_space<vmem>>, %arg10: memref<16x2xf32, #tpu.memory_space<vmem>>) attributes {dimension_semantics = [#tpu.dimension_semantics<parallel>], iteration_bounds = array<i64: 2>, scalar_prefetch = 0 : i64, scratch_operands = 0 : i64, tpu.core_type = #tpu.core_type<tc>, window_params = [{transform_indices = @transform_0, window_bounds = array<i64: 16, 128>}, {transform_indices = @transform_1, window_bounds = array<i64: 16, 128>}, {transform_indices = @transform_2, window_bounds = array<i64: 16, 2>}, {pipeline_mode = #tpu.pipeline_mode<synchronous>, transform_indices = @transform_3, window_bounds = array<i64: 128, 128>}, {pipeline_mode = #tpu.pipeline_mode<synchronous>, transform_indices = @transform_4, window_bounds = array<i64: 1, 128>}, {pipeline_mode = #tpu.pipeline_mode<synchronous>, transform_indices = @transform_5, window_bounds = array<i64: 128, 128>}, {pipeline_mode = #tpu.pipeline_mode<synchronous>, transform_indices = @transform_6, window_bounds = array<i64: 1, 128>}, {pipeline_mode = #tpu.pipeline_mode<synchronous>, transform_indices = @transform_7, window_bounds = array<i64: 2, 128>}, {pipeline_mode = #tpu.pipeline_mode<synchronous>, transform_indices = @transform_8, window_bounds = array<i64: 2, 128>}, {transform_indices = @transform_9, window_bounds = array<i64: 16, 2>}]} {
    %c0 = arith.constant 0 : index
    %c0_0 = arith.constant 0 : index
    %0 = vector.load %arg1[%c0, %c0_0] : memref<16x128xf32, #tpu.memory_space<vmem>>, vector<16x128xf32>
    %1 = arith.truncf %0 : vector<16x128xf32> to vector<16x128xbf16>
    %c0_1 = arith.constant 0 : index
    %c0_2 = arith.constant 0 : index
    %2 = vector.load %arg4[%c0_1, %c0_2] : memref<128x128xbf16, #tpu.memory_space<vmem>>, vector<128x128xbf16>
    %cst = arith.constant dense<0.000000e+00> : vector<16x128xf32>
    %3 = tpu.matmul %1, %2, %cst {dimension_numbers = #tpu.dot_dimension_numbers<[1], [0], [0], [1], [0, 0, 1, 1], [], []>} : vector<16x128xbf16>, vector<128x128xbf16>, vector<16x128xf32> -> vector<16x128xf32>
    %c0_3 = arith.constant 0 : index
    %c0_4 = arith.constant 0 : index
    %4 = vector.load %arg5[%c0_3, %c0_4] : memref<1x128xf32, #tpu.memory_space<vmem>>, vector<1x128xf32>
    %5 = vector.broadcast %4 : vector<1x128xf32> to vector<16x128xf32>
    %6 = arith.addf %3, %5 : vector<16x128xf32>
    %7 = math.tanh %6 : vector<16x128xf32>
    %c0_5 = arith.constant 0 : index
    %c0_6 = arith.constant 0 : index
    %8 = vector.load %arg2[%c0_5, %c0_6] : memref<16x128xf32, #tpu.memory_space<vmem>>, vector<16x128xf32>
    %9 = arith.truncf %8 : vector<16x128xf32> to vector<16x128xbf16>
    %c0_7 = arith.constant 0 : index
    %c0_8 = arith.constant 0 : index
    %10 = vector.load %arg6[%c0_7, %c0_8] : memref<128x128xbf16, #tpu.memory_space<vmem>>, vector<128x128xbf16>
    %cst_9 = arith.constant dense<0.000000e+00> : vector<16x128xf32>
    %11 = tpu.matmul %9, %10, %cst_9 {dimension_numbers = #tpu.dot_dimension_numbers<[1], [0], [0], [1], [0, 0, 1, 1], [], []>} : vector<16x128xbf16>, vector<128x128xbf16>, vector<16x128xf32> -> vector<16x128xf32>
    %c0_10 = arith.constant 0 : index
    %c0_11 = arith.constant 0 : index
    %12 = vector.load %arg7[%c0_10, %c0_11] : memref<1x128xf32, #tpu.memory_space<vmem>>, vector<1x128xf32>
    %13 = vector.broadcast %12 : vector<1x128xf32> to vector<16x128xf32>
    %14 = arith.addf %11, %13 : vector<16x128xf32>
    %15 = math.tanh %14 : vector<16x128xf32>
    %c0_12 = arith.constant 0 : index
    %c0_13 = arith.constant 0 : index
    %16 = vector.load %arg8[%c0_12, %c0_13] : memref<2x128xf32, #tpu.memory_space<vmem>>, vector<1x128xf32>
    %17 = vector.broadcast %16 : vector<1x128xf32> to vector<16x128xf32>
    %18 = arith.mulf %7, %17 : vector<16x128xf32>
    %cst_14 = arith.constant dense<0.000000e+00> : vector<16xf32>
    %19 = vector.multi_reduction <add>, %18, %cst_14 [1] : vector<16x128xf32> to vector<16xf32>
    %20 = vector.shape_cast %19 : vector<16xf32> to vector<16x1xf32>
    %c1 = arith.constant 1 : index
    %c0_15 = arith.constant 0 : index
    %21 = vector.load %arg8[%c1, %c0_15] : memref<2x128xf32, #tpu.memory_space<vmem>>, vector<1x128xf32>
    %22 = vector.broadcast %21 : vector<1x128xf32> to vector<16x128xf32>
    %23 = arith.mulf %7, %22 : vector<16x128xf32>
    %cst_16 = arith.constant dense<0.000000e+00> : vector<16xf32>
    %24 = vector.multi_reduction <add>, %23, %cst_16 [1] : vector<16x128xf32> to vector<16xf32>
    %25 = vector.shape_cast %24 : vector<16xf32> to vector<16x1xf32>
    %26 = tpu.concatenate %20, %25 in 1 : vector<16x1xf32>, vector<16x1xf32> -> vector<16x2xf32>
    %c0_17 = arith.constant 0 : index
    %c0_18 = arith.constant 0 : index
    %27 = vector.load %arg9[%c0_17, %c0_18] : memref<2x128xf32, #tpu.memory_space<vmem>>, vector<1x128xf32>
    %28 = vector.broadcast %27 : vector<1x128xf32> to vector<16x128xf32>
    %29 = arith.mulf %15, %28 : vector<16x128xf32>
    %cst_19 = arith.constant dense<0.000000e+00> : vector<16xf32>
    %30 = vector.multi_reduction <add>, %29, %cst_19 [1] : vector<16x128xf32> to vector<16xf32>
    %31 = vector.shape_cast %30 : vector<16xf32> to vector<16x1xf32>
    %c1_20 = arith.constant 1 : index
    %c0_21 = arith.constant 0 : index
    %32 = vector.load %arg9[%c1_20, %c0_21] : memref<2x128xf32, #tpu.memory_space<vmem>>, vector<1x128xf32>
    %33 = vector.broadcast %32 : vector<1x128xf32> to vector<16x128xf32>
    %34 = arith.mulf %15, %33 : vector<16x128xf32>
    %cst_22 = arith.constant dense<0.000000e+00> : vector<16xf32>
    %35 = vector.multi_reduction <add>, %34, %cst_22 [1] : vector<16x128xf32> to vector<16xf32>
    %36 = vector.shape_cast %35 : vector<16xf32> to vector<16x1xf32>
    %37 = tpu.concatenate %31, %36 in 1 : vector<16x1xf32>, vector<16x1xf32> -> vector<16x2xf32>
    %38 = arith.addf %26, %37 : vector<16x2xf32>
    %c0_23 = arith.constant 0 : index
    %c0_24 = arith.constant 0 : index
    %39 = vector.load %arg3[%c0_23, %c0_24] : memref<16x2xf32, #tpu.memory_space<vmem>>, vector<16x2xf32>
    %40 = arith.addf %38, %39 : vector<16x2xf32>
    %c0_25 = arith.constant 0 : index
    %c0_26 = arith.constant 0 : index
    %41 = vector.load %arg10[%c0_25, %c0_26] : memref<16x2xf32, #tpu.memory_space<vmem>>, vector<16x2xf32>
    tpu.vector_store %arg10[%c0_25, %c0_26], %40 {strides = array<i32>} : memref<16x2xf32, #tpu.memory_space<vmem>>, vector<16x2xf32>,
    return
  }
  func.func @transform_0(%arg0: i32) -> (i32, i32) {
    %c0_i32 = arith.constant 0 : i32
    %c0_i32_0 = arith.constant 0 : i32
    return %arg0, %c0_i32 : i32, i32
  }
  func.func @transform_1(%arg0: i32) -> (i32, i32) {
    %c0_i32 = arith.constant 0 : i32
    %c0_i32_0 = arith.constant 0 : i32
    return %arg0, %c0_i32 : i32, i32
  }
  func.func @transform_2(%arg0: i32) -> (i32, i32) {
    %c0_i32 = arith.constant 0 : i32
    %c0_i32_0 = arith.constant 0 : i32
    return %arg0, %c0_i32 : i32, i32
  }
  func.func @transform_3(%arg0: i32) -> (i32, i32) {
    %c0_i32 = arith.constant 0 : i32
    %c0_i32_0 = arith.constant 0 : i32
    %c0_i32_1 = arith.constant 0 : i32
    return %c0_i32, %c0_i32_0 : i32, i32
  }
  func.func @transform_4(%arg0: i32) -> (i32, i32) {
    %c0_i32 = arith.constant 0 : i32
    %c0_i32_0 = arith.constant 0 : i32
    %c0_i32_1 = arith.constant 0 : i32
    return %c0_i32, %c0_i32_0 : i32, i32
  }
  func.func @transform_5(%arg0: i32) -> (i32, i32) {
    %c0_i32 = arith.constant 0 : i32
    %c0_i32_0 = arith.constant 0 : i32
    %c0_i32_1 = arith.constant 0 : i32
    return %c0_i32, %c0_i32_0 : i32, i32
  }
  func.func @transform_6(%arg0: i32) -> (i32, i32) {
    %c0_i32 = arith.constant 0 : i32
    %c0_i32_0 = arith.constant 0 : i32
    %c0_i32_1 = arith.constant 0 : i32
    return %c0_i32, %c0_i32_0 : i32, i32
  }
  func.func @transform_7(%arg0: i32) -> (i32, i32) {
    %c0_i32 = arith.constant 0 : i32
    %c0_i32_0 = arith.constant 0 : i32
    %c0_i32_1 = arith.constant 0 : i32
    return %c0_i32, %c0_i32_0 : i32, i32
  }
  func.func @transform_8(%arg0: i32) -> (i32, i32) {
    %c0_i32 = arith.constant 0 : i32
    %c0_i32_0 = arith.constant 0 : i32
    %c0_i32_1 = arith.constant 0 : i32
    return %c0_i32, %c0_i32_0 : i32, i32
  }
  func.func @transform_9(%arg0: i32) -> (i32, i32) {
    %c0_i32 = arith.constant 0 : i32
    %c0_i32_0 = arith.constant 0 : i32
    return %arg0, %c0_i32 : i32, i32
  }
}

module attributes {stable_mosaic.version = 11 : i64} {
  func.func @_pair_wise_kernel(%arg0: i32, %arg1: memref<16x128xf32, #tpu.memory_space<vmem>>, %arg2: memref<16x128xf32, #tpu.memory_space<vmem>>, %arg3: memref<16x2xf32, #tpu.memory_space<vmem>>, %arg4: memref<128x128xbf16, #tpu.memory_space<vmem>>, %arg5: memref<1x128xf32, #tpu.memory_space<vmem>>, %arg6: memref<128x128xbf16, #tpu.memory_space<vmem>>, %arg7: memref<1x128xf32, #tpu.memory_space<vmem>>, %arg8: memref<2x128xf32, #tpu.memory_space<vmem>>, %arg9: memref<2x128xf32, #tpu.memory_space<vmem>>, %arg10: memref<16x2xf32, #tpu.memory_space<vmem>>) attributes {dimension_semantics = [#tpu.dimension_semantics<parallel>], iteration_bounds = array<i64: 2>, scalar_prefetch = 0 : i64, scratch_operands = 0 : i64, tpu.core_type = #tpu.core_type<tc>, window_params = [{transform_indices = @transform_0, window_bounds = array<i64: 16, 128>}, {transform_indices = @transform_1, window_bounds = array<i64: 16, 128>}, {transform_indices = @transform_2, window_bounds = array<i64: 16, 2>}, {pipeline_mode = #tpu.pipeline_mode<synchronous>, transform_indices = @transform_3, window_bounds = array<i64: 128, 128>}, {pipeline_mode = #tpu.pipeline_mode<synchronous>, transform_indices = @transform_4, window_bounds = array<i64: 1, 128>}, {pipeline_mode = #tpu.pipeline_mode<synchronous>, transform_indices = @transform_5, window_bounds = array<i64: 128, 128>}, {pipeline_mode = #tpu.pipeline_mode<synchronous>, transform_indices = @transform_6, window_bounds = array<i64: 1, 128>}, {pipeline_mode = #tpu.pipeline_mode<synchronous>, transform_indices = @transform_7, window_bounds = array<i64: 2, 128>}, {pipeline_mode = #tpu.pipeline_mode<synchronous>, transform_indices = @transform_8, window_bounds = array<i64: 2, 128>}, {transform_indices = @transform_9, window_bounds = array<i64: 16, 2>}]} {
    %c0 = arith.constant 0 : index
    %c0_0 = arith.constant 0 : index
    %0 = vector.load %arg1[%c0, %c0_0] : memref<16x128xf32, #tpu.memory_space<vmem>>, vector<16x128xf32>
    %1 = arith.truncf %0 : vector<16x128xf32> to vector<16x128xbf16>
    %c0_1 = arith.constant 0 : index
    %c0_2 = arith.constant 0 : index
    %2 = vector.load %arg4[%c0_1, %c0_2] : memref<128x128xbf16, #tpu.memory_space<vmem>>, vector<128x128xbf16>
    %cst = arith.constant dense<0.000000e+00> : vector<16x128xf32>
    %3 = tpu.matmul %1, %2, %cst {dimension_numbers = #tpu.dot_dimension_numbers<[1], [0], [0], [1], [0, 0, 1, 1], [], []>} : vector<16x128xbf16>, vector<128x128xbf16>, vector<16x128xf32> -> vector<16x128xf32>
    %c0_3 = arith.constant 0 : index
    %c0_4 = arith.constant 0 : index
    %4 = vector.load %arg5[%c0_3, %c0_4] : memref<1x128xf32, #tpu.memory_space<vmem>>, vector<1x128xf32>
    %5 = vector.broadcast %4 : vector<1x128xf32> to vector<16x128xf32>
    %6 = arith.addf %3, %5 : vector<16x128xf32>
    %7 = math.tanh %6 : vector<16x128xf32>
    %c0_5 = arith.constant 0 : index
    %c0_6 = arith.constant 0 : index
    %8 = vector.load %arg2[%c0_5, %c0_6] : memref<16x128xf32, #tpu.memory_space<vmem>>, vector<16x128xf32>
    %9 = arith.truncf %8 : vector<16x128xf32> to vector<16x128xbf16>
    %c0_7 = arith.constant 0 : index
    %c0_8 = arith.constant 0 : index
    %10 = vector.load %arg6[%c0_7, %c0_8] : memref<128x128xbf16, #tpu.memory_space<vmem>>, vector<128x128xbf16>
    %cst_9 = arith.constant dense<0.000000e+00> : vector<16x128xf32>
    %11 = tpu.matmul %9, %10, %cst_9 {dimension_numbers = #tpu.dot_dimension_numbers<[1], [0], [0], [1], [0, 0, 1, 1], [], []>} : vector<16x128xbf16>, vector<128x128xbf16>, vector<16x128xf32> -> vector<16x128xf32>
    %c0_10 = arith.constant 0 : index
    %c0_11 = arith.constant 0 : index
    %12 = vector.load %arg7[%c0_10, %c0_11] : memref<1x128xf32, #tpu.memory_space<vmem>>, vector<1x128xf32>
    %13 = vector.broadcast %12 : vector<1x128xf32> to vector<16x128xf32>
    %14 = arith.addf %11, %13 : vector<16x128xf32>
    %15 = math.tanh %14 : vector<16x128xf32>
    %c0_12 = arith.constant 0 : index
    %c0_13 = arith.constant 0 : index
    %16 = vector.load %arg8[%c0_12, %c0_13] : memref<2x128xf32, #tpu.memory_space<vmem>>, vector<1x128xf32>
    %17 = vector.broadcast %16 : vector<1x128xf32> to vector<16x128xf32>
    %18 = arith.mulf %7, %17 : vector<16x128xf32>
    %cst_14 = arith.constant dense<0.000000e+00> : vector<16xf32>
    %19 = vector.multi_reduction <add>, %18, %cst_14 [1] : vector<16x128xf32> to vector<16xf32>
    %20 = vector.shape_cast %19 : vector<16xf32> to vector<16x1xf32>
    %c1 = arith.constant 1 : index
    %c0_15 = arith.constant 0 : index
    %21 = vector.load %arg8[%c1, %c0_15] : memref<2x128xf32, #tpu.memory_space<vmem>>, vector<1x128xf32>
    %22 = vector.broadcast %21 : vector<1x128xf32> to vector<16x128xf32>
    %23 = arith.mulf %7, %22 : vector<16x128xf32>
    %cst_16 = arith.constant dense<0.000000e+00> : vector<16xf32>
    %24 = vector.multi_reduction <add>, %23, %cst_16 [1] : vector<16x128xf32> to vector<16xf32>
    %25 = vector.shape_cast %24 : vector<16xf32> to vector<16x1xf32>
    %26 = tpu.concatenate %20, %25 in 1 : vector<16x1xf32>, vector<16x1xf32> -> vector<16x2xf32>
    %c0_17 = arith.constant 0 : index
    %c0_18 = arith.constant 0 : index
    %27 = vector.load %arg9[%c0_17, %c0_18] : memref<2x128xf32, #tpu.memory_space<vmem>>, vector<1x128xf32>
    %28 = vector.broadcast %27 : vector<1x128xf32> to vector<16x128xf32>
    %29 = arith.mulf %15, %28 : vector<16x128xf32>
    %cst_19 = arith.constant dense<0.000000e+00> : vector<16xf32>
    %30 = vector.multi_reduction <add>, %29, %cst_19 [1] : vector<16x128xf32> to vector<16xf32>
    %31 = vector.shape_cast %30 : vector<16xf32> to vector<16x1xf32>
    %c1_20 = arith.constant 1 : index
    %c0_21 = arith.constant 0 : index
    %32 = vector.load %arg9[%c1_20, %c0_21] : memref<2x128xf32, #tpu.memory_space<vmem>>, vector<1x128xf32>
    %33 = vector.broadcast %32 : vector<1x128xf32> to vector<16x128xf32>
    %34 = arith.mulf %15, %33 : vector<16x128xf32>
    %cst_22 = arith.constant dense<0.000000e+00> : vector<16xf32>
    %35 = vector.multi_reduction <add>, %34, %cst_22 [1] : vector<16x128xf32> to vector<16xf32>
    %36 = vector.shape_cast %35 : vector<16xf32> to vector<16x1xf32>
    %37 = tpu.concatenate %31, %36 in 1 : vector<16x1xf32>, vector<16x1xf32> -> vector<16x2xf32>
    %38 = arith.addf %26, %37 : vector<16x2xf32>
    %c0_23 = arith.constant 0 : index
    %c0_24 = arith.constant 0 : index
    %39 = vector.load %arg3[%c0_23, %c0_24] : memref<16x2xf32, #tpu.memory_space<vmem>>, vector<16x2xf32>
    %40 = arith.addf %38, %39 : vector<16x2xf32>
    %c0_25 = arith.constant 0 : index
    %c0_26 = arith.constant 0 : index
    %41 = vector.load %arg10[%c0_25, %c0_26] : memref<16x2xf32, #tpu.memory_space<vmem>>, vector<16x2xf32>
    tpu.vector_store %arg10[%c0_25, %c0_26], %40 {strides = array<i32>} : memref<16x2xf32, #tpu.memory_space<vmem>>, vector<16x2xf32>,
    return
  }
  func.func @transform_0(%arg0: i32) -> (i32, i32) {
    %c0_i32 = arith.constant 0 : i32
    %c0_i32_0 = arith.constant 0 : i32
    return %arg0, %c0_i32 : i32, i32
  }
  func.func @transform_1(%arg0: i32) -> (i32, i32) {
    %c0_i32 = arith.constant 0 : i32
    %c0_i32_0 = arith.constant 0 : i32
    return %arg0, %c0_i32 : i32, i32
  }
  func.func @transform_2(%arg0: i32) -> (i32, i32) {
    %c0_i32 = arith.constant 0 : i32
    %c0_i32_0 = arith.constant 0 : i32
    return %arg0, %c0_i32 : i32, i32
  }
  func.func @transform_3(%arg0: i32) -> (i32, i32) {
    %c0_i32 = arith.constant 0 : i32
    %c0_i32_0 = arith.constant 0 : i32
    %c0_i32_1 = arith.constant 0 : i32
    return %c0_i32, %c0_i32_0 : i32, i32
  }
  func.func @transform_4(%arg0: i32) -> (i32, i32) {
    %c0_i32 = arith.constant 0 : i32
    %c0_i32_0 = arith.constant 0 : i32
    %c0_i32_1 = arith.constant 0 : i32
    return %c0_i32, %c0_i32_0 : i32, i32
  }
  func.func @transform_5(%arg0: i32) -> (i32, i32) {
    %c0_i32 = arith.constant 0 : i32
    %c0_i32_0 = arith.constant 0 : i32
    %c0_i32_1 = arith.constant 0 : i32
    return %c0_i32, %c0_i32_0 : i32, i32
  }
  func.func @transform_6(%arg0: i32) -> (i32, i32) {
    %c0_i32 = arith.constant 0 : i32
    %c0_i32_0 = arith.constant 0 : i32
    %c0_i32_1 = arith.constant 0 : i32
    return %c0_i32, %c0_i32_0 : i32, i32
  }
  func.func @transform_7(%arg0: i32) -> (i32, i32) {
    %c0_i32 = arith.constant 0 : i32
    %c0_i32_0 = arith.constant 0 : i32
    %c0_i32_1 = arith.constant 0 : i32
    return %c0_i32, %c0_i32_0 : i32, i32
  }
  func.func @transform_8(%arg0: i32) -> (i32, i32) {
    %c0_i32 = arith.constant 0 : i32
    %c0_i32_0 = arith.constant 0 : i32
    %c0_i32_1 = arith.constant 0 : i32
    return %c0_i32, %c0_i32_0 : i32, i32
  }
  func.func @transform_9(%arg0: i32) -> (i32, i32) {
    %c0_i32 = arith.constant 0 : i32
    %c0_i32_0 = arith.constant 0 : i32
    return %arg0, %c0_i32 : i32, i32
  }
}

</mosaic_0001>

<bundles_post_ra>
// kernel: tpu_custom_call.1
= control target key start
LH: loop header
LB: loop body
LE: loop exit
PB: predicated region body
PF: predicated region fallthrough
CT: control target
= control target key end

     0   :  { %14 = vsyncpa [#allocation3], 0  ;;  %s1426_s0 = inlined_call_operand.vmem [shape: f32[32,128], index: 0, kind: input, shape index: {}]   ;;  %s1427_s1 = inlined_call_operand.hbm [shape: f32[32,128], index: 1, kind: input, shape index: {}]   ;;  %s1428_s2 = inlined_call_operand.vmem [shape: f32[32,2], index: 2, kind: input, shape index: {}]   ;;  %s1429_s3 = inlined_call_operand.hbm [shape: bf16[128,128], index: 3, kind: input, shape index: {}]   ;;  %s1430_s4 = inlined_call_operand.vmem [shape: f32[1,128], index: 4, kind: input, shape index: {}]   ;;  %s1431_s5 = inlined_call_operand.hbm [shape: bf16[128,128], index: 5, kind: input, shape index: {}]   ;;  %s1432_s6 = inlined_call_operand.vmem [shape: f32[1,128], index: 6, kind: input, shape index: {}]   ;;  %s1433_s7 = inlined_call_operand.vmem [shape: f32[2,128], index: 7, kind: input, shape index: {}]   ;;  %s1434_s8 = inlined_call_operand.vmem [shape: f32[2,128], index: 8, kind: input, shape index: {}]   ;;  %s1435_s9 = inlined_call_operand.vmem [shape: f32[32,2], index: 9, kind: output, shape index: {}]  }
   0x1   :  { %16 = vsyncpa [#allocation3 + $0x1], 0 }
   0x2   :  { %17 = vsyncpa [#allocation5], 0  ;;  %s1208_s30 = smov 0   ;;  %s1210_s10 = smov 0  }
   0x3   :  { %s1212_s11 = smov 0   ;;  %s1214_s12 = smov 0  }
   0x4 LB: > { %s831_s13 = sadd.s32 4294967295, %s1147_s12   ;;  %p69_p0 = scmp.ne.s32.totalorder %s1139_s10, %s1135_s30  ;;  %s1147_s12 = sphi %s1214_s12, %s1451_s12   ;;  %s1143_s11 = sphi %s1212_s11, %s1450_s11   ;;  %s1139_s10 = sphi %s1210_s10, %s1449_s10   ;;  %s1135_s30 = sphi %s1208_s30, %s1448_s30  }
   0x5   : > { %p1230_p1 = scmp.eq.s32.totalorder %s831_s13, 0  ;;  %p833_p2 = scmp.ge.s32.totalorder %s1147_s12, 1 }
   0x6   : > { %p258_p3 = scmp.lt.s32.totalorder %s1147_s12, 3  ;;  %s1149_s17 = smov [#allocation4]  }
   0x7   : > { %s1440_s14 = scalar_select %p1230_p1, 1, 0 }
   0x8   : > { %p1238_p4 = por %p1230_p1, %p69_p0  ;;  %p1242_p5 = pnand %p833_p2, %p258_p3 }
   0x9   : > { %s270_s18 = sshll.u32 %s1149_s17, 4  ;;  %s1150_s20 = smov [#allocation6]   ;;  %s271_s18 = int_to_ptr.vmem [resolvable:$true] %s270_s18 }
   0xa   : > { %s1441_s15 = scalar_select %p1238_p4, 1, 0 }
   0xb   : > { %s1442_s16 = scalar_select %p1242_p5, 1, 0 }
   0xc   : > { %p943_p6 = pneg %p1242_p5  ;;  %s286_s21 = sshll.u32 %s1150_s20, 4  ;;  %s1254_s21 = int_to_ptr.vmem [resolvable:$true] %s286_s21 }
   0xd   : > { %s1023_s24 = scalar_lea.hbm %s1429_s3, 1024 }
   0xe   : > { %p1250_p7 = pnand %p943_p6, %p1230_p1  ;;  %p1024_p8 = scmp.ne.s32.totalorder %s1429_s3, %s1023_s24 }
   0xf   : > { %p1030_p12 = scmp.lt.u32.totalorder %s1023_s24, %s1429_s3 }
  0x10   : > { %p1025_p9 = pneg %p1250_p7 }
  0x12   : > { %p1026_p10 = pnand %p1025_p9, %p1024_p8 }
  0x14   : > { %p1027_p11 = pneg %p1026_p10 }
  0x16   : > { %p1032_p13 = pnand %p1030_p12, %p1027_p11 }
  0x18   : > { %1035 = shalt.err (!%p1032_p13)
}
  0x19   : > { %s1036_s29 = scalar_lea.vmem %s271_s18, 1024  ;;  %p1044_p6 = scmp.lt.s32.totalorder %s271_s18, %s271_s18 }
  0x1a   : > { %p1037_p0 = scmp.ne.s32.totalorder %s271_s18, %s1036_s29  ;;  %p1045_p1 = scmp.lt.s32.totalorder %s1036_s29, %s1036_s29 }
  0x1c   : > { %p1039_p2 = pnand %p1037_p0, %p1025_p9  ;;  %p1046_p4 = por %p1045_p1, %p1044_p6 }
  0x1e   : > { %p1040_p3 = pneg %p1039_p2 }
  0x20   : > { %p1047_p5 = pnand %p1046_p4, %p1040_p3 }
  0x22   : > { %1050 = shalt.err (!%p1047_p5)
}
  0x23   : > { %s1151_s30 = smov 64   ;;  %s1152_s17 = smov 4  }
  0x24   : > { %946 = dma.hbm_to_vmem [thread:$0]  (!%p1250_p7), %s1429_s3, 1024, %s271_s18, [#allocation5], %s1151_s30, %s1151_s30, %s1152_s17  }
  0x25   : > { %s1051_s25 = scalar_lea.hbm %s1431_s5, 1024 }
  0x26   : > { %p1052_p8 = scmp.ne.s32.totalorder %s1431_s5, %s1051_s25  ;;  %p1058_p5 = scmp.lt.u32.totalorder %s1051_s25, %s1431_s5 }
  0x28   : > { %p1054_p1 = pnand %p1052_p8, %p1025_p9 }
  0x2a   : > { %p1055_p4 = pneg %p1054_p1 }
  0x2c   : > { %p1060_p10 = pnand %p1058_p5, %p1055_p4 }
  0x2e   : > { %1063 = shalt.err (!%p1060_p10)
}
  0x2f   : > { %s1064_s18 = scalar_lea.vmem %s1254_s21, 1024  ;;  %p1072_p0 = scmp.lt.s32.totalorder %s1254_s21, %s1254_s21 }
  0x30   : > { %p1065_p11 = scmp.ne.s32.totalorder %s1254_s21, %s1064_s18  ;;  %p1073_p2 = scmp.lt.s32.totalorder %s1064_s18, %s1064_s18 }
  0x32   : > { %p1067_p12 = pnand %p1065_p11, %p1025_p9  ;;  %p1074_p3 = por %p1073_p2, %p1072_p0 }
  0x34   : > { %p1068_p13 = pneg %p1067_p12 }
  0x36   : > { %p1075_p6 = pnand %p1074_p3, %p1068_p13 }
  0x38   : > { %1078 = shalt.err (!%p1075_p6)
}
  0x39   : > { %949 = dma.hbm_to_vmem [thread:$0]  (!%p1250_p7), %s1431_s5, 1024, %s1254_s21, [#allocation5], %s1151_s30, %s1151_s30, %s1152_s17  }
  0x3a   : > { %s1304_s23 = sadd.s32 1, %s1147_s12   ;;  %s56_s24 = sadd.s32 1, %s1143_s11 }
  0x3b   : > { %s53_s19 = ssub.s32 %s1147_s12, %s1304_s23  ;;  %p63_p9 = scmp.ne.s32.totalorder %s1143_s11, %s1139_s10 }
  0x3c   : > { %p54_p8 = scmp.eq.s32.totalorder %s53_s19, 0  ;;  %p64_p1 = scmp.eq.s32.totalorder %s1147_s12, 0 }
  0x3d   : > { %p956_p4 = scmp.lt.s32.totalorder %s1147_s12, 2  ;;  %s318_s25 = sand.u32 1, %s1143_s11  }
  0x3e   : > { %s1315_s26 = scalar_select %p54_p8, %s1143_s11, %s56_s24  }
  0x3f   : > { %p65_p5 = por %p64_p1, %p63_p9  ;;  %s837_s27 = sshll.u32 %s318_s25, 4 }
  0x40   : > { %s874_s28 = sshll.u32 %s1147_s12, 8  ;;  %s322_s21 = scalar_lea.vmem [#allocation2], %s837_s27 }
  0x41   : > { %s1321_s20 = scalar_lea.hbm %s1427_s1, %s874_s28  ;;  %s329_s30 = sshll.u32 %s322_s21, 4  ;;  %s1327_s30 = int_to_ptr.vmem [resolvable:$true] %s329_s30 }
  0x42   : > { %p1323_p7 = pnand %p956_p4, %p65_p5  ;;  %s1329_s22 = scalar_lea.sflag [#allocation3], %s318_s25 }
  0x43   : > { %s1079_s24 = scalar_lea.hbm %s1321_s20, 256  ;;  %s1084_s28 = scalar_lea.hbm %s1427_s1, 512 }
  0x44   : > { %p1080_p10 = scmp.ne.s32.totalorder %s1321_s20, %s1079_s24  ;;  %p1081_p11 = pneg %p1323_p7 }
  0x45   : > { %p1085_p0 = scmp.lt.u32.totalorder %s1321_s20, %s1427_s1  ;;  %p1086_p2 = scmp.lt.u32.totalorder %s1084_s28, %s1079_s24 }
  0x46   : > { %p1082_p12 = pnand %p1081_p11, %p1080_p10  ;;  %p1088_p6 = scmp.lt.u32.totalorder %s1079_s24, %s1321_s20 }
  0x47   : > { %p1087_p3 = por %p1086_p2, %p1085_p0 }
  0x48   : > { %p1083_p13 = pneg %p1082_p12 }
  0x49   : > { %p1089_p9 = por %p1088_p6, %p1087_p3 }
  0x4b   : > { %p1090_p8 = pnand %p1089_p9, %p1083_p13 }
  0x4d   : > { %1093 = shalt.err (!%p1090_p8)
}
  0x4e   : > { %s1094_s25 = scalar_lea.vmem %s1327_s30, 256  ;;  %s1153_s21 = smov [#allocation2]  }
  0x4f   : > { %p1095_p1 = scmp.ne.s32.totalorder %s1327_s30, %s1094_s25  ;;  %s1099_s19 = sshll.u32 %s1153_s21, 4  ;;  %s1100_s19 = int_to_ptr.vmem [resolvable:$false] %s1099_s19 }
  0x50   : > { %s1101_s27 = scalar_lea.vmem %s1100_s19, 512  ;;  %p1102_p10 = scmp.lt.s32.totalorder %s1327_s30, %s1100_s19 }
  0x51   : > { %p1097_p4 = pnand %p1095_p1, %p1081_p11  ;;  %p1103_p12 = scmp.lt.s32.totalorder %s1101_s27, %s1094_s25 }
  0x53   : > { %p1098_p5 = pneg %p1097_p4  ;;  %p1104_p0 = por %p1103_p12, %p1102_p10 }
  0x55   : > { %p1105_p2 = pnand %p1104_p0, %p1098_p5 }
  0x57   : > { %1108 = shalt.err (!%p1105_p2)
}
  0x58   : > { %s1154_s24 = smov 128   ;;  %s1155_s28 = smov 8  }
  0x59   : > { %953 = dma.hbm_to_vmem [thread:$0]  (!%p1323_p7), %s1321_s20, 256, %s1327_s30, %s1329_s22, %s1154_s24, %s1154_s24, %s1155_s28  }
  0x5a   : > { %p1445_p11 = scmp.ne.s32.totalorder %s1442_s16, 0 }
  0x5b   : > { %s352_s29 = sand.u32 (!%p1445_p11), 1, %s1139_s10   ;;  %p1446_p13 = scmp.ne.s32.totalorder (!%p1445_p11), %s1441_s15, 0 }
  0x5c   : > { %350 = sbr.rel (%p1445_p11) target bundleno = 525 (0x20d), region = 56  ;;  %s1360_s18 = sshll.u32 (!%p1445_p11), %s352_s29, 4 }
  0x5d   : > { %s353_s25 = scalar_lea.sflag (!%p1445_p11), [#allocation3], %s352_s29  ;;  %s356_s21 = scalar_lea.vmem (!%p1445_p11), [#allocation2], %s1360_s18 }
  0x63   : > { %1126 = dma.done.wait (%p1446_p13), %s353_s25, 256  }
  0x64   : > { %1128 = vsyncadd (%p1446_p13), %s353_s25, 4294967040  ;;  %p1447_p3 = scmp.ne.s32.totalorder %s1440_s14, 0 }
  0x66   : > { %1130 = dma.done.wait (%p1447_p3), [#allocation5], 2048  }
  0x67   : > { %1132 = vsyncadd (%p1447_p3), [#allocation5], 4294965248  ;;  %v1156_v0 = vmov 0.0   ;;  %vm1157_vm0 = vmmov 0   ;;  %v999_v1 = vld [vmem:[#allocation4] sm:$0xff]   ;;  %v1001_v3 = vld [vmem:[#allocation4 + $0x8] sm:$0xff]  }
  0x68   : > { %893 = vmatprep.subr.bf16.mxu0 %v1156_v0  ;;  %913 = vmatprep.subr.bf16.mxu1 %v1156_v0  ;;  %v1000_v2 = vld [vmem:[#allocation6] sm:$0xff]   ;;  %v1002_v4 = vld [vmem:[#allocation6 + $0x8] sm:$0xff]   ;;  %v1003_v5 = vld [vmem:[#allocation4 + $0x10] sm:$0xff]   ;;  %s844_s14 = sshll.u32 %s831_s13, 1  ;;  %vm685_vm1 = vcmask 7168   ;;  %vm718_vm2 = vcmask 15360  }
  0x69   : > { %909 = vmatprep.mubr.msk.bf16.mxu0 %vm1157_vm0, %v1156_v0  ;;  %929 = vmatprep.mubr.msk.bf16.mxu1 %vm1157_vm0, %v1156_v0  ;;  %v1004_v6 = vld [vmem:[#allocation6 + $0x10] sm:$0xff]   ;;  %v1005_v7 = vld [vmem:[#allocation4 + $0x18] sm:$0xff]   ;;  %p410_p7 = scmp.lt.s32.totalorder %s844_s14, 3  ;;  %v1007_v9 = vld [vmem:[#allocation4 + $0x20] sm:$0xff]  }
  0x6a   : > { %894 = vmatpush3.bf16.msra.mxu0 %v999_v1  ;;  %914 = vmatpush3.bf16.msra.mxu1 %v1000_v2  ;;  %v1006_v8 = vld [vmem:[#allocation6 + $0x18] sm:$0xff]   ;;  %v1008_v10 = vld [vmem:[#allocation6 + $0x20] sm:$0xff]   ;;  %v1009_v11 = vld [vmem:[#allocation4 + $0x28] sm:$0xff]  }
  0x6b   : > { %895 = vmatprep.subr.bf16.mxu0 %v1156_v0  ;;  %915 = vmatprep.subr.bf16.mxu1 %v1156_v0  ;;  %s1453_s14 = smov (!%p410_p7, %s844_s14), 3  ;;  %v1010_v12 = vld [vmem:[#allocation6 + $0x28] sm:$0xff]   ;;  %v1011_v13 = vld [vmem:[#allocation4 + $0x30] sm:$0xff]   ;;  %v1013_v15 = vld [vmem:[#allocation4 + $0x38] sm:$0xff]  }
  0x6c   : > { %s1373_s12 = sshll.u32 %s1453_s14, 3  ;;  %v1012_v14 = vld [vmem:[#allocation6 + $0x30] sm:$0xff]   ;;  %v1014_v18 = vld [vmem:[#allocation6 + $0x38] sm:$0xff]   ;;  %v850_v23 = vld [vmem:[%s1430_s4] ss:$0 sm:$0xff] }
  0x6d   : > { %s413_s16 = scalar_lea.vmem %s1426_s0, %s1373_s12  ;;  %v546_v19 = vld [vmem:[%s356_s21] sm:$0xff]  ;;  %v547_v20 = vld [vmem:[%s356_s21 + $0x8] sm:$0xff]  ;;  %s420_s15 = scalar_lea.vmem %s1428_s2, %s1373_s12 }
  0x6e   : > { %896 = vmatpush3.bf16.msra.mxu0 %v1001_v3  ;;  %916 = vmatpush3.bf16.msra.mxu1 %v1002_v4  ;;  %v429_v16 = vld [vmem:[%s413_s16] sm:$0xff]  ;;  %v430_v17 = vld [vmem:[%s413_s16 + $0x8] sm:$0xff]  ;;  %v548_v22 = vpack.c.bf16 %v547_v20, %v546_v19  ;;  %s426_s30 = scalar_lea.vmem %s1435_s9, %s1373_s12 }
  0x6f   : > { %897 = vmatprep.subr.bf16.mxu0 %v1156_v0  ;;  %917 = vmatprep.subr.bf16.mxu1 %v1156_v0  ;;  %v431_v21 = vpack.c.bf16 %v430_v17, %v429_v16  ;;  %v859_v24 = vld [vmem:[%s1432_s6] ss:$0 sm:$0xff]  ;;  %v869_v43 = vld [vmem:[%s1433_s7 + $0x1] ss:$0 sm:$0xff]  ;;  %v715_v3 = vld [vmem:[%s420_s15 + $0x8] sm:$0xff] }
  0x70   : > { %v868_v37 = vld [vmem:[%s1433_s7] ss:$0 sm:$0xff]  ;;  %v871_v44 = vld [vmem:[%s1434_s8 + $0x1] ss:$0 sm:$0xff] }
  0x71   : > { %v870_v38 = vld [vmem:[%s1434_s8] ss:$0 sm:$0xff] }
  0x72   : > { %898 = vmatpush3.bf16.msra.mxu0 %v1003_v5  ;;  %918 = vmatpush3.bf16.msra.mxu1 %v1004_v6  ;;  %v714_v59 = vld [vmem:[%s420_s15] sm:$0xff] }
  0x73   : > { %899 = vmatprep.subr.bf16.mxu0 %v1156_v0  ;;  %919 = vmatprep.subr.bf16.mxu1 %v1156_v0 }
  0x76   : > { %900 = vmatpush3.bf16.msra.mxu0 %v1005_v7  ;;  %920 = vmatpush3.bf16.msra.mxu1 %v1006_v8 }
  0x77   : > { %901 = vmatprep.subr.bf16.mxu0 %v1156_v0  ;;  %921 = vmatprep.subr.bf16.mxu1 %v1156_v0 }
  0x7a   : > { %902 = vmatpush3.bf16.msra.mxu0 %v1007_v9  ;;  %922 = vmatpush3.bf16.msra.mxu1 %v1008_v10 }
  0x7b   : > { %903 = vmatprep.subr.bf16.mxu0 %v1156_v0  ;;  %923 = vmatprep.subr.bf16.mxu1 %v1156_v0 }
  0x7e   : > { %904 = vmatpush3.bf16.msra.mxu0 %v1009_v11  ;;  %924 = vmatpush3.bf16.msra.mxu1 %v1010_v12 }
  0x7f   : > { %905 = vmatprep.subr.bf16.mxu0 %v1156_v0  ;;  %925 = vmatprep.subr.bf16.mxu1 %v1156_v0 }
  0x82   : > { %906 = vmatpush3.bf16.msra.mxu0 %v1011_v13  ;;  %926 = vmatpush3.bf16.msra.mxu1 %v1012_v14 }
  0x83   : > { %907 = vmatprep.subr.bf16.mxu0 %v1156_v0  ;;  %927 = vmatprep.subr.bf16.mxu1 %v1156_v0 }
  0x86   : > { %908 = vmatpush3.bf16.msra.mxu0 %v1013_v15  ;;  %928 = vmatpush3.bf16.msra.mxu1 %v1014_v18 }
  0x89   : > { %910 = vmatmul.mubr.bf16.vlgmr.msra.gmra.mrb[0].mxu0 %v431_v21  ;;  %930 = vmatmul.mubr.bf16.vlgmr.msra.gmra.mrb[0].mxu1 %v548_v22 }
 0x15c   : > { %v537_v25 = vpop.f32.mrb[0].mxu0  ;;  %v654_v27 = vpop.f32.mrb[0].mxu1 }
 0x15d   : > { %v538_v26 = vadd.f32 %v850_v23, %v537_v25  ;;  %v911_v28 = vpop.f32.mrb[1].mxu0  ;;  %v655_v29 = vadd.f32 %v859_v24, %v654_v27  ;;  %v931_v30 = vpop.f32.mrb[1].mxu1 }
 0x15e   : > { %v540_v31 = vpop.f32.mrb[2].mxu0  ;;  %v657_v32 = vpop.f32.mrb[2].mxu1 }
 0x15f   : > { %1015 = vtanh.f32 %v538_v26  ;;  %v912_v33 = vpop.f32.mrb[3].mxu0  ;;  %v932_v34 = vpop.f32.mrb[3].mxu1  ;;  %v541_v35 = vadd.f32 %v850_v23, %v540_v31  ;;  %v658_v36 = vadd.f32 %v859_v24, %v657_v32 }
 0x160   : > { %1017 = vtanh.f32 %v655_v29 }
 0x161   : > { %1019 = vtanh.f32 %v541_v35 }
 0x162   : > { %1021 = vtanh.f32 %v658_v36 }
 0x169   : > { %v1016_v39 = vpop.eup %1015 }
 0x16a   : > { %v1018_v40 = vpop.eup %1017  ;;  %v668_v41 = vmul.f32 %v1016_v39, %v868_v37  ;;  %v679_v45 = vmul.f32 %v1016_v39, %v869_v43 }
 0x16b   : > { %v693_v42 = vmul.f32 %v1018_v40, %v870_v38  ;;  %v1020_v46 = vpop.eup %1019  ;;  %v704_v47 = vmul.f32 %v1018_v40, %v871_v44 }
 0x16c   : > { %670 = vadd.xlane.f32.xlu0 %v668_v41  ;;  %v669_v48 = vmul.f32 %v1020_v46, %v868_v37  ;;  %v1022_v49 = vpop.eup %1021  ;;  %v680_v50 = vmul.f32 %v1020_v46, %v869_v43 }
 0x16d   : > { %695 = vadd.xlane.f32.xlu1 %v693_v42  ;;  %v694_v51 = vmul.f32 %v1022_v49, %v870_v38  ;;  %v705_v52 = vmul.f32 %v1022_v49, %v871_v44 }
 0x170   : > { %681 = vadd.xlane.f32.xlu0 %v679_v45 }
 0x171   : > { %706 = vadd.xlane.f32.xlu1 %v704_v47 }
 0x174   : > { %672 = vadd.xlane.f32.xlu0 %v669_v48 }
 0x175   : > { %683 = vadd.xlane.f32.xlu1 %v680_v50 }
 0x178   : > { %697 = vadd.xlane.f32.xlu0 %v694_v51 }
 0x179   : > { %708 = vadd.xlane.f32.xlu1 %v705_v52 }
 0x1f9   : > { %v671_v53 = vpop.xlane.xlu0 %670 }
 0x1fa   : > { %v696_v54 = vpop.xlane.xlu1 %695 }
 0x1fd   : > { %v682_v55 = vpop.xlane.xlu0 %681 }
 0x1fe   : > { %v707_v56 = vpop.xlane.xlu1 %706  ;;  %v686_v57 = vsel %vm685_vm1, %v671_v53, %v682_v55 }
 0x1ff   : > { %v710_v58 = vsel %vm685_vm1, %v696_v54, %v707_v56 }
 0x200   : > { %v712_v60 = vadd.f32 %v710_v58, %v686_v57 }
 0x201   : > { %v673_v61 = vpop.xlane.xlu0 %672 }
 0x202   : > { %v716_v62 = vadd.f32 %v714_v59, %v712_v60  ;;  %v684_v63 = vpop.xlane.xlu1 %683 }
 0x203   : > { %v687_v2 = vsel %vm685_vm1, %v673_v61, %v684_v63 }
 0x204   : > { %719 = vst.msk [vmem:[%s426_s30] sm:$0xff] %vm718_vm2, %v716_v62 }
 0x205   : > { %v698_v0 = vpop.xlane.xlu0 %697 }
 0x206   : > { %v709_v1 = vpop.xlane.xlu1 %708 }
 0x207   : > { %v711_v4 = vsel %vm685_vm1, %v698_v0, %v709_v1 }
 0x208   : > { %v713_v5 = vadd.f32 %v711_v4, %v687_v2 }
 0x20a   : > { %v717_v6 = vadd.f32 %v715_v3, %v713_v5 }
 0x20c   : > { %720 = vst.msk [vmem:[%s426_s30 + $0x8] sm:$0xff] %vm718_vm2, %v717_v6 }
 0x20d PF: > { %p20_p6 = scmp.ge.s32.totalorder %s1304_s23, 4   ;;  %s1448_s30 = smov %s1139_s10 }
 0x20e   : > { %s1449_s10 = smov %s1143_s11  ;;  %s1450_s11 = smov %s1315_s26 }
 0x20f   : > { %s1451_s12 = smov %s1304_s23  ;;  %22 = sbr.rel (!%p20_p6) target bundleno = 4 (0x4), region = 110 }
 0x216   :  { %743 = vsyncpa [#allocation3], 1 }
 0x217   :  { %745 = vsyncpa [#allocation3 + $0x1], 1 }
 0x218   :  { %746 = vsyncpa [#allocation5], 1 }

// kernel: tpu_custom_call.1
= control target key start
LH: loop header
LB: loop body
LE: loop exit
PB: predicated region body
PF: predicated region fallthrough
CT: control target
= control target key end

     0   :  { %14 = vsyncpa [#allocation3], 0  ;;  %s1426_s0 = inlined_call_operand.vmem [shape: f32[32,128], index: 0, kind: input, shape index: {}]   ;;  %s1427_s1 = inlined_call_operand.hbm [shape: f32[32,128], index: 1, kind: input, shape index: {}]   ;;  %s1428_s2 = inlined_call_operand.vmem [shape: f32[32,2], index: 2, kind: input, shape index: {}]   ;;  %s1429_s3 = inlined_call_operand.hbm [shape: bf16[128,128], index: 3, kind: input, shape index: {}]   ;;  %s1430_s4 = inlined_call_operand.vmem [shape: f32[1,128], index: 4, kind: input, shape index: {}]   ;;  %s1431_s5 = inlined_call_operand.hbm [shape: bf16[128,128], index: 5, kind: input, shape index: {}]   ;;  %s1432_s6 = inlined_call_operand.vmem [shape: f32[1,128], index: 6, kind: input, shape index: {}]   ;;  %s1433_s7 = inlined_call_operand.vmem [shape: f32[2,128], index: 7, kind: input, shape index: {}]   ;;  %s1434_s8 = inlined_call_operand.vmem [shape: f32[2,128], index: 8, kind: input, shape index: {}]   ;;  %s1435_s9 = inlined_call_operand.vmem [shape: f32[32,2], index: 9, kind: output, shape index: {}]  }
   0x1   :  { %16 = vsyncpa [#allocation3 + $0x1], 0 }
   0x2   :  { %17 = vsyncpa [#allocation5], 0  ;;  %s1208_s30 = smov 0   ;;  %s1210_s10 = smov 0  }
   0x3   :  { %s1212_s11 = smov 0   ;;  %s1214_s12 = smov 0  }
   0x4 LB: > { %s831_s13 = sadd.s32 4294967295, %s1147_s12   ;;  %p69_p0 = scmp.ne.s32.totalorder %s1139_s10, %s1135_s30  ;;  %s1147_s12 = sphi %s1214_s12, %s1451_s12   ;;  %s1143_s11 = sphi %s1212_s11, %s1450_s11   ;;  %s1139_s10 = sphi %s1210_s10, %s1449_s10   ;;  %s1135_s30 = sphi %s1208_s30, %s1448_s30  }
   0x5   : > { %p1230_p1 = scmp.eq.s32.totalorder %s831_s13, 0  ;;  %p833_p2 = scmp.ge.s32.totalorder %s1147_s12, 1 }
   0x6   : > { %p258_p3 = scmp.lt.s32.totalorder %s1147_s12, 3  ;;  %s1149_s17 = smov [#allocation4]  }
   0x7   : > { %s1440_s14 = scalar_select %p1230_p1, 1, 0 }
   0x8   : > { %p1238_p4 = por %p1230_p1, %p69_p0  ;;  %p1242_p5 = pnand %p833_p2, %p258_p3 }
   0x9   : > { %s270_s18 = sshll.u32 %s1149_s17, 4  ;;  %s1150_s20 = smov [#allocation6]   ;;  %s271_s18 = int_to_ptr.vmem [resolvable:$true] %s270_s18 }
   0xa   : > { %s1441_s15 = scalar_select %p1238_p4, 1, 0 }
   0xb   : > { %s1442_s16 = scalar_select %p1242_p5, 1, 0 }
   0xc   : > { %p943_p6 = pneg %p1242_p5  ;;  %s286_s21 = sshll.u32 %s1150_s20, 4  ;;  %s1254_s21 = int_to_ptr.vmem [resolvable:$true] %s286_s21 }
   0xd   : > { %s1023_s24 = scalar_lea.hbm %s1429_s3, 1024 }
   0xe   : > { %p1250_p7 = pnand %p943_p6, %p1230_p1  ;;  %p1024_p8 = scmp.ne.s32.totalorder %s1429_s3, %s1023_s24 }
   0xf   : > { %p1030_p12 = scmp.lt.u32.totalorder %s1023_s24, %s1429_s3 }
  0x10   : > { %p1025_p9 = pneg %p1250_p7 }
  0x12   : > { %p1026_p10 = pnand %p1025_p9, %p1024_p8 }
  0x14   : > { %p1027_p11 = pneg %p1026_p10 }
  0x16   : > { %p1032_p13 = pnand %p1030_p12, %p1027_p11 }
  0x18   : > { %1035 = shalt.err (!%p1032_p13)
}
  0x19   : > { %s1036_s29 = scalar_lea.vmem %s271_s18, 1024  ;;  %p1044_p6 = scmp.lt.s32.totalorder %s271_s18, %s271_s18 }
  0x1a   : > { %p1037_p0 = scmp.ne.s32.totalorder %s271_s18, %s1036_s29  ;;  %p1045_p1 = scmp.lt.s32.totalorder %s1036_s29, %s1036_s29 }
  0x1c   : > { %p1039_p2 = pnand %p1037_p0, %p1025_p9  ;;  %p1046_p4 = por %p1045_p1, %p1044_p6 }
  0x1e   : > { %p1040_p3 = pneg %p1039_p2 }
  0x20   : > { %p1047_p5 = pnand %p1046_p4, %p1040_p3 }
  0x22   : > { %1050 = shalt.err (!%p1047_p5)
}
  0x23   : > { %s1151_s30 = smov 64   ;;  %s1152_s17 = smov 4  }
  0x24   : > { %946 = dma.hbm_to_vmem [thread:$0]  (!%p1250_p7), %s1429_s3, 1024, %s271_s18, [#allocation5], %s1151_s30, %s1151_s30, %s1152_s17  }
  0x25   : > { %s1051_s25 = scalar_lea.hbm %s1431_s5, 1024 }
  0x26   : > { %p1052_p8 = scmp.ne.s32.totalorder %s1431_s5, %s1051_s25  ;;  %p1058_p5 = scmp.lt.u32.totalorder %s1051_s25, %s1431_s5 }
  0x28   : > { %p1054_p1 = pnand %p1052_p8, %p1025_p9 }
  0x2a   : > { %p1055_p4 = pneg %p1054_p1 }
  0x2c   : > { %p1060_p10 = pnand %p1058_p5, %p1055_p4 }
  0x2e   : > { %1063 = shalt.err (!%p1060_p10)
}
  0x2f   : > { %s1064_s18 = scalar_lea.vmem %s1254_s21, 1024  ;;  %p1072_p0 = scmp.lt.s32.totalorder %s1254_s21, %s1254_s21 }
  0x30   : > { %p1065_p11 = scmp.ne.s32.totalorder %s1254_s21, %s1064_s18  ;;  %p1073_p2 = scmp.lt.s32.totalorder %s1064_s18, %s1064_s18 }
  0x32   : > { %p1067_p12 = pnand %p1065_p11, %p1025_p9  ;;  %p1074_p3 = por %p1073_p2, %p1072_p0 }
  0x34   : > { %p1068_p13 = pneg %p1067_p12 }
  0x36   : > { %p1075_p6 = pnand %p1074_p3, %p1068_p13 }
  0x38   : > { %1078 = shalt.err (!%p1075_p6)
}
  0x39   : > { %949 = dma.hbm_to_vmem [thread:$0]  (!%p1250_p7), %s1431_s5, 1024, %s1254_s21, [#allocation5], %s1151_s30, %s1151_s30, %s1152_s17  }
  0x3a   : > { %s1304_s23 = sadd.s32 1, %s1147_s12   ;;  %s56_s24 = sadd.s32 1, %s1143_s11 }
  0x3b   : > { %s53_s19 = ssub.s32 %s1147_s12, %s1304_s23  ;;  %p63_p9 = scmp.ne.s32.totalorder %s1143_s11, %s1139_s10 }
  0x3c   : > { %p54_p8 = scmp.eq.s32.totalorder %s53_s19, 0  ;;  %p64_p1 = scmp.eq.s32.totalorder %s1147_s12, 0 }
  0x3d   : > { %p956_p4 = scmp.lt.s32.totalorder %s1147_s12, 2  ;;  %s318_s25 = sand.u32 1, %s1143_s11  }
  0x3e   : > { %s1315_s26 = scalar_select %p54_p8, %s1143_s11, %s56_s24  }
  0x3f   : > { %p65_p5 = por %p64_p1, %p63_p9  ;;  %s837_s27 = sshll.u32 %s318_s25, 4 }
  0x40   : > { %s874_s28 = sshll.u32 %s1147_s12, 8  ;;  %s322_s21 = scalar_lea.vmem [#allocation2], %s837_s27 }
  0x41   : > { %s1321_s20 = scalar_lea.hbm %s1427_s1, %s874_s28  ;;  %s329_s30 = sshll.u32 %s322_s21, 4  ;;  %s1327_s30 = int_to_ptr.vmem [resolvable:$true] %s329_s30 }
  0x42   : > { %p1323_p7 = pnand %p956_p4, %p65_p5  ;;  %s1329_s22 = scalar_lea.sflag [#allocation3], %s318_s25 }
  0x43   : > { %s1079_s24 = scalar_lea.hbm %s1321_s20, 256  ;;  %s1084_s28 = scalar_lea.hbm %s1427_s1, 512 }
  0x44   : > { %p1080_p10 = scmp.ne.s32.totalorder %s1321_s20, %s1079_s24  ;;  %p1081_p11 = pneg %p1323_p7 }
  0x45   : > { %p1085_p0 = scmp.lt.u32.totalorder %s1321_s20, %s1427_s1  ;;  %p1086_p2 = scmp.lt.u32.totalorder %s1084_s28, %s1079_s24 }
  0x46   : > { %p1082_p12 = pnand %p1081_p11, %p1080_p10  ;;  %p1088_p6 = scmp.lt.u32.totalorder %s1079_s24, %s1321_s20 }
  0x47   : > { %p1087_p3 = por %p1086_p2, %p1085_p0 }
  0x48   : > { %p1083_p13 = pneg %p1082_p12 }
  0x49   : > { %p1089_p9 = por %p1088_p6, %p1087_p3 }
  0x4b   : > { %p1090_p8 = pnand %p1089_p9, %p1083_p13 }
  0x4d   : > { %1093 = shalt.err (!%p1090_p8)
}
  0x4e   : > { %s1094_s25 = scalar_lea.vmem %s1327_s30, 256  ;;  %s1153_s21 = smov [#allocation2]  }
  0x4f   : > { %p1095_p1 = scmp.ne.s32.totalorder %s1327_s30, %s1094_s25  ;;  %s1099_s19 = sshll.u32 %s1153_s21, 4  ;;  %s1100_s19 = int_to_ptr.vmem [resolvable:$false] %s1099_s19 }
  0x50   : > { %s1101_s27 = scalar_lea.vmem %s1100_s19, 512  ;;  %p1102_p10 = scmp.lt.s32.totalorder %s1327_s30, %s1100_s19 }
  0x51   : > { %p1097_p4 = pnand %p1095_p1, %p1081_p11  ;;  %p1103_p12 = scmp.lt.s32.totalorder %s1101_s27, %s1094_s25 }
  0x53   : > { %p1098_p5 = pneg %p1097_p4  ;;  %p1104_p0 = por %p1103_p12, %p1102_p10 }
  0x55   : > { %p1105_p2 = pnand %p1104_p0, %p1098_p5 }
  0x57   : > { %1108 = shalt.err (!%p1105_p2)
}
  0x58   : > { %s1154_s24 = smov 128   ;;  %s1155_s28 = smov 8  }
  0x59   : > { %953 = dma.hbm_to_vmem [thread:$0]  (!%p1323_p7), %s1321_s20, 256, %s1327_s30, %s1329_s22, %s1154_s24, %s1154_s24, %s1155_s28  }
  0x5a   : > { %p1445_p11 = scmp.ne.s32.totalorder %s1442_s16, 0 }
  0x5b   : > { %s352_s29 = sand.u32 (!%p1445_p11), 1, %s1139_s10   ;;  %p1446_p13 = scmp.ne.s32.totalorder (!%p1445_p11), %s1441_s15, 0 }
  0x5c   : > { %350 = sbr.rel (%p1445_p11) target bundleno = 525 (0x20d), region = 56  ;;  %s1360_s18 = sshll.u32 (!%p1445_p11), %s352_s29, 4 }
  0x5d   : > { %s353_s25 = scalar_lea.sflag (!%p1445_p11), [#allocation3], %s352_s29  ;;  %s356_s21 = scalar_lea.vmem (!%p1445_p11), [#allocation2], %s1360_s18 }
  0x63   : > { %1126 = dma.done.wait (%p1446_p13), %s353_s25, 256  }
  0x64   : > { %1128 = vsyncadd (%p1446_p13), %s353_s25, 4294967040  ;;  %p1447_p3 = scmp.ne.s32.totalorder %s1440_s14, 0 }
  0x66   : > { %1130 = dma.done.wait (%p1447_p3), [#allocation5], 2048  }
  0x67   : > { %1132 = vsyncadd (%p1447_p3), [#allocation5], 4294965248  ;;  %v1156_v0 = vmov 0.0   ;;  %vm1157_vm0 = vmmov 0   ;;  %v999_v1 = vld [vmem:[#allocation4] sm:$0xff]   ;;  %v1001_v3 = vld [vmem:[#allocation4 + $0x8] sm:$0xff]  }
  0x68   : > { %893 = vmatprep.subr.bf16.mxu0 %v1156_v0  ;;  %913 = vmatprep.subr.bf16.mxu1 %v1156_v0  ;;  %v1000_v2 = vld [vmem:[#allocation6] sm:$0xff]   ;;  %v1002_v4 = vld [vmem:[#allocation6 + $0x8] sm:$0xff]   ;;  %v1003_v5 = vld [vmem:[#allocation4 + $0x10] sm:$0xff]   ;;  %s844_s14 = sshll.u32 %s831_s13, 1  ;;  %vm685_vm1 = vcmask 7168   ;;  %vm718_vm2 = vcmask 15360  }
  0x69   : > { %909 = vmatprep.mubr.msk.bf16.mxu0 %vm1157_vm0, %v1156_v0  ;;  %929 = vmatprep.mubr.msk.bf16.mxu1 %vm1157_vm0, %v1156_v0  ;;  %v1004_v6 = vld [vmem:[#allocation6 + $0x10] sm:$0xff]   ;;  %v1005_v7 = vld [vmem:[#allocation4 + $0x18] sm:$0xff]   ;;  %p410_p7 = scmp.lt.s32.totalorder %s844_s14, 3  ;;  %v1007_v9 = vld [vmem:[#allocation4 + $0x20] sm:$0xff]  }
  0x6a   : > { %894 = vmatpush3.bf16.msra.mxu0 %v999_v1  ;;  %914 = vmatpush3.bf16.msra.mxu1 %v1000_v2  ;;  %v1006_v8 = vld [vmem:[#allocation6 + $0x18] sm:$0xff]   ;;  %v1008_v10 = vld [vmem:[#allocation6 + $0x20] sm:$0xff]   ;;  %v1009_v11 = vld [vmem:[#allocation4 + $0x28] sm:$0xff]  }
  0x6b   : > { %895 = vmatprep.subr.bf16.mxu0 %v1156_v0  ;;  %915 = vmatprep.subr.bf16.mxu1 %v1156_v0  ;;  %s1453_s14 = smov (!%p410_p7, %s844_s14), 3  ;;  %v1010_v12 = vld [vmem:[#allocation6 + $0x28] sm:$0xff]   ;;  %v1011_v13 = vld [vmem:[#allocation4 + $0x30] sm:$0xff]   ;;  %v1013_v15 = vld [vmem:[#allocation4 + $0x38] sm:$0xff]  }
  0x6c   : > { %s1373_s12 = sshll.u32 %s1453_s14, 3  ;;  %v1012_v14 = vld [vmem:[#allocation6 + $0x30] sm:$0xff]   ;;  %v1014_v18 = vld [vmem:[#allocation6 + $0x38] sm:$0xff]   ;;  %v850_v23 = vld [vmem:[%s1430_s4] ss:$0 sm:$0xff] }
  0x6d   : > { %s413_s16 = scalar_lea.vmem %s1426_s0, %s1373_s12  ;;  %v546_v19 = vld [vmem:[%s356_s21] sm:$0xff]  ;;  %v547_v20 = vld [vmem:[%s356_s21 + $0x8] sm:$0xff]  ;;  %s420_s15 = scalar_lea.vmem %s1428_s2, %s1373_s12 }
  0x6e   : > { %896 = vmatpush3.bf16.msra.mxu0 %v1001_v3  ;;  %916 = vmatpush3.bf16.msra.mxu1 %v1002_v4  ;;  %v429_v16 = vld [vmem:[%s413_s16] sm:$0xff]  ;;  %v430_v17 = vld [vmem:[%s413_s16 + $0x8] sm:$0xff]  ;;  %v548_v22 = vpack.c.bf16 %v547_v20, %v546_v19  ;;  %s426_s30 = scalar_lea.vmem %s1435_s9, %s1373_s12 }
  0x6f   : > { %897 = vmatprep.subr.bf16.mxu0 %v1156_v0  ;;  %917 = vmatprep.subr.bf16.mxu1 %v1156_v0  ;;  %v431_v21 = vpack.c.bf16 %v430_v17, %v429_v16  ;;  %v859_v24 = vld [vmem:[%s1432_s6] ss:$0 sm:$0xff]  ;;  %v869_v43 = vld [vmem:[%s1433_s7 + $0x1] ss:$0 sm:$0xff]  ;;  %v715_v3 = vld [vmem:[%s420_s15 + $0x8] sm:$0xff] }
  0x70   : > { %v868_v37 = vld [vmem:[%s1433_s7] ss:$0 sm:$0xff]  ;;  %v871_v44 = vld [vmem:[%s1434_s8 + $0x1] ss:$0 sm:$0xff] }
  0x71   : > { %v870_v38 = vld [vmem:[%s1434_s8] ss:$0 sm:$0xff] }
  0x72   : > { %898 = vmatpush3.bf16.msra.mxu0 %v1003_v5  ;;  %918 = vmatpush3.bf16.msra.mxu1 %v1004_v6  ;;  %v714_v59 = vld [vmem:[%s420_s15] sm:$0xff] }
  0x73   : > { %899 = vmatprep.subr.bf16.mxu0 %v1156_v0  ;;  %919 = vmatprep.subr.bf16.mxu1 %v1156_v0 }
  0x76   : > { %900 = vmatpush3.bf16.msra.mxu0 %v1005_v7  ;;  %920 = vmatpush3.bf16.msra.mxu1 %v1006_v8 }
  0x77   : > { %901 = vmatprep.subr.bf16.mxu0 %v1156_v0  ;;  %921 = vmatprep.subr.bf16.mxu1 %v1156_v0 }
  0x7a   : > { %902 = vmatpush3.bf16.msra.mxu0 %v1007_v9  ;;  %922 = vmatpush3.bf16.msra.mxu1 %v1008_v10 }
  0x7b   : > { %903 = vmatprep.subr.bf16.mxu0 %v1156_v0  ;;  %923 = vmatprep.subr.bf16.mxu1 %v1156_v0 }
  0x7e   : > { %904 = vmatpush3.bf16.msra.mxu0 %v1009_v11  ;;  %924 = vmatpush3.bf16.msra.mxu1 %v1010_v12 }
  0x7f   : > { %905 = vmatprep.subr.bf16.mxu0 %v1156_v0  ;;  %925 = vmatprep.subr.bf16.mxu1 %v1156_v0 }
  0x82   : > { %906 = vmatpush3.bf16.msra.mxu0 %v1011_v13  ;;  %926 = vmatpush3.bf16.msra.mxu1 %v1012_v14 }
  0x83   : > { %907 = vmatprep.subr.bf16.mxu0 %v1156_v0  ;;  %927 = vmatprep.subr.bf16.mxu1 %v1156_v0 }
  0x86   : > { %908 = vmatpush3.bf16.msra.mxu0 %v1013_v15  ;;  %928 = vmatpush3.bf16.msra.mxu1 %v1014_v18 }
  0x89   : > { %910 = vmatmul.mubr.bf16.vlgmr.msra.gmra.mrb[0].mxu0 %v431_v21  ;;  %930 = vmatmul.mubr.bf16.vlgmr.msra.gmra.mrb[0].mxu1 %v548_v22 }
 0x15c   : > { %v537_v25 = vpop.f32.mrb[0].mxu0  ;;  %v654_v27 = vpop.f32.mrb[0].mxu1 }
 0x15d   : > { %v538_v26 = vadd.f32 %v850_v23, %v537_v25  ;;  %v911_v28 = vpop.f32.mrb[1].mxu0  ;;  %v655_v29 = vadd.f32 %v859_v24, %v654_v27  ;;  %v931_v30 = vpop.f32.mrb[1].mxu1 }
 0x15e   : > { %v540_v31 = vpop.f32.mrb[2].mxu0  ;;  %v657_v32 = vpop.f32.mrb[2].mxu1 }
 0x15f   : > { %1015 = vtanh.f32 %v538_v26  ;;  %v912_v33 = vpop.f32.mrb[3].mxu0  ;;  %v932_v34 = vpop.f32.mrb[3].mxu1  ;;  %v541_v35 = vadd.f32 %v850_v23, %v540_v31  ;;  %v658_v36 = vadd.f32 %v859_v24, %v657_v32 }
 0x160   : > { %1017 = vtanh.f32 %v655_v29 }
 0x161   : > { %1019 = vtanh.f32 %v541_v35 }
 0x162   : > { %1021 = vtanh.f32 %v658_v36 }
 0x169   : > { %v1016_v39 = vpop.eup %1015 }
 0x16a   : > { %v1018_v40 = vpop.eup %1017  ;;  %v668_v41 = vmul.f32 %v1016_v39, %v868_v37  ;;  %v679_v45 = vmul.f32 %v1016_v39, %v869_v43 }
 0x16b   : > { %v693_v42 = vmul.f32 %v1018_v40, %v870_v38  ;;  %v1020_v46 = vpop.eup %1019  ;;  %v704_v47 = vmul.f32 %v1018_v40, %v871_v44 }
 0x16c   : > { %670 = vadd.xlane.f32.xlu0 %v668_v41  ;;  %v669_v48 = vmul.f32 %v1020_v46, %v868_v37  ;;  %v1022_v49 = vpop.eup %1021  ;;  %v680_v50 = vmul.f32 %v1020_v46, %v869_v43 }
 0x16d   : > { %695 = vadd.xlane.f32.xlu1 %v693_v42  ;;  %v694_v51 = vmul.f32 %v1022_v49, %v870_v38  ;;  %v705_v52 = vmul.f32 %v1022_v49, %v871_v44 }
 0x170   : > { %681 = vadd.xlane.f32.xlu0 %v679_v45 }
 0x171   : > { %706 = vadd.xlane.f32.xlu1 %v704_v47 }
 0x174   : > { %672 = vadd.xlane.f32.xlu0 %v669_v48 }
 0x175   : > { %683 = vadd.xlane.f32.xlu1 %v680_v50 }
 0x178   : > { %697 = vadd.xlane.f32.xlu0 %v694_v51 }
 0x179   : > { %708 = vadd.xlane.f32.xlu1 %v705_v52 }
 0x1f9   : > { %v671_v53 = vpop.xlane.xlu0 %670 }
 0x1fa   : > { %v696_v54 = vpop.xlane.xlu1 %695 }
 0x1fd   : > { %v682_v55 = vpop.xlane.xlu0 %681 }
 0x1fe   : > { %v707_v56 = vpop.xlane.xlu1 %706  ;;  %v686_v57 = vsel %vm685_vm1, %v671_v53, %v682_v55 }
 0x1ff   : > { %v710_v58 = vsel %vm685_vm1, %v696_v54, %v707_v56 }
 0x200   : > { %v712_v60 = vadd.f32 %v710_v58, %v686_v57 }
 0x201   : > { %v673_v61 = vpop.xlane.xlu0 %672 }
 0x202   : > { %v716_v62 = vadd.f32 %v714_v59, %v712_v60  ;;  %v684_v63 = vpop.xlane.xlu1 %683 }
 0x203   : > { %v687_v2 = vsel %vm685_vm1, %v673_v61, %v684_v63 }
 0x204   : > { %719 = vst.msk [vmem:[%s426_s30] sm:$0xff] %vm718_vm2, %v716_v62 }
 0x205   : > { %v698_v0 = vpop.xlane.xlu0 %697 }
 0x206   : > { %v709_v1 = vpop.xlane.xlu1 %708 }
 0x207   : > { %v711_v4 = vsel %vm685_vm1, %v698_v0, %v709_v1 }
 0x208   : > { %v713_v5 = vadd.f32 %v711_v4, %v687_v2 }
 0x20a   : > { %v717_v6 = vadd.f32 %v715_v3, %v713_v5 }
 0x20c   : > { %720 = vst.msk [vmem:[%s426_s30 + $0x8] sm:$0xff] %vm718_vm2, %v717_v6 }
 0x20d PF: > { %p20_p6 = scmp.ge.s32.totalorder %s1304_s23, 4   ;;  %s1448_s30 = smov %s1139_s10 }
 0x20e   : > { %s1449_s10 = smov %s1143_s11  ;;  %s1450_s11 = smov %s1315_s26 }
 0x20f   : > { %s1451_s12 = smov %s1304_s23  ;;  %22 = sbr.rel (!%p20_p6) target bundleno = 4 (0x4), region = 110 }
 0x216   :  { %743 = vsyncpa [#allocation3], 1 }
 0x217   :  { %745 = vsyncpa [#allocation3 + $0x1], 1 }
 0x218   :  { %746 = vsyncpa [#allocation5], 1 }

</bundles_post_ra>
